<compile_context>
chip_gen: v7x
topology: tpu7x:2x2x1
jax: 0.10.0
libtpu: 0.0.40
codegen_flags: <defaults>
</compile_context>

<pallas_src>
import functools

import jax
import jax.numpy as jnp
from jax.experimental import pallas as pl
from jax.experimental.pallas import tpu as pltpu


def _int_avgpool_kernel(x_ref, m_ref, o_ref, *, scale):
    """x_ref: (TR, g*k*W) activation rows.
       m_ref: (g*k*W, g*Wo) constant 0/1 pooling matrix (bf16).
       o_ref: (TR, g*Wo)."""
    # Single dense elementwise pass (clamp + floor), vreg-resident.
    q = jnp.floor(jnp.clip(x_ref[...].astype(jnp.float32), 0.0, 127.0))
    # Window sums via MXU.  Values are exact integers in [0, 127] and the mask
    # is 0/1, so bf16 operands + f32 accumulation are exact.
    pooled = jnp.dot(q.astype(jnp.bfloat16), m_ref[...],
                     preferred_element_type=jnp.float32)
    o_ref[...] = (pooled * scale).astype(o_ref.dtype)


def _pick_group(ho, wo, kw):
    """# of pooled output rows folded into one kernel row (for lane density)."""
    divisors = [d for d in range(1, ho + 1) if ho % d == 0]
    g = ho  # fallback: fold all of Ho (small-image case)
    for d in divisors:
        if d * wo >= 128:
            g = d
            break
    # Keep the (g*kw, g*wo) pooling matrix small (~<= 2 MiB of f32 equivalent).
    while g > 1 and (g * kw) * (g * wo) * 4 > 2 * 1024 * 1024:
        smaller = [d for d in divisors if d < g]
        g = smaller[-1] if smaller else 1
    return g


def _pick_row_tile(rows, row_bytes, budget_bytes):
    """Row tile: full array if it fits, else the largest multiple of 8 in budget."""
    if rows * row_bytes <= budget_bytes:
        return rows
    tr = max(8, (budget_bytes // row_bytes) // 8 * 8)
    return min(tr, rows)


@functools.partial(jax.jit, static_argnames=("kernel_size", "s_x", "s_y"))
def int_avg_pool2d(x_nchw, *, kernel_size, s_x, s_y):
    """Matches IntAvgPool2d.forward for AvgPool2d(kernel_size) with the default
    stride (= kernel_size) and no padding.

    # TODO(synk): general stride/padding/count_include_pad of nn.AvgPool2d and
    # non-divisible spatial dims are not implemented (default-config case only).
    # TODO(synk): if upstream activations are truly int8, feeding int8 here
    # would cut HBM read traffic 4x; the module interface is float, so the
    # float path is kept.
    """
    n, c, h, w = x_nchw.shape
    k = int(kernel_size)
    assert h % k == 0 and w % k == 0, "spatial dims must divide kernel_size"
    ho, wo = h // k, w // k
    kw = k * w
    out_dtype = jnp.promote_types(x_nchw.dtype, jnp.float32)
    scale = (float(s_x) / float(s_y)) / float(k * k)

    # ---- free, contiguous reshapes (no transposes) --------------------------
    g = _pick_group(ho, wo, kw)
    rows = (n * c * ho) // g
    in_lanes = g * kw
    out_lanes = g * wo
    x2d = x_nchw.reshape(rows, in_lanes)

    # Constant block-diagonal pooling matrix: within each folded group hg,
    # input element (ky*W + wvar) contributes to output column (wvar // k).
    j = jnp.arange(kw)
    m_base = (((j % w) // k)[:, None] == jnp.arange(wo)[None, :]).astype(jnp.float32)
    m = jnp.kron(jnp.eye(g, dtype=jnp.float32), m_base).astype(jnp.bfloat16)

    # ---- tiling: bound VMEM per block, many pipeline steps -------------------
    row_bytes = (in_lanes + out_lanes) * 4
    tr = _pick_row_tile(rows, row_bytes, budget_bytes=6 * 1024 * 1024)
    grid = (pl.cdiv(rows, tr),)

    out2d = pl.pallas_call(
        functools.partial(_int_avgpool_kernel, scale=scale),
        out_shape=jax.ShapeDtypeStruct((rows, out_lanes), out_dtype),
        grid=grid,
        in_specs=[
            pl.BlockSpec((tr, in_lanes), lambda r: (r, 0)),
            pl.BlockSpec((in_lanes, out_lanes), lambda r: (0, 0)),  # stays resident
        ],
        out_specs=pl.BlockSpec((tr, out_lanes), lambda r: (r, 0)),
        compiler_params=pltpu.CompilerParams(
            dimension_semantics=("parallel",),
            vmem_limit_bytes=32 * 1024 * 1024,
        ),
    )(x2d, m)

    # Free reshape back to the PyTorch NCHW-pooled shape.
    return out2d.reshape(n, c, ho, wo)


if __name__ == "__main__":
    # Deterministic "int_params" (would come from the module's __init__).
    s_x = 0.05
    s_y = 0.10
    kernel_size = 2

    key = jax.random.PRNGKey(0)
    # Range chosen so the clamp at both 0 and 127 is exercised.
    x = jax.random.uniform(
        key, (2, 4, 16, 16), dtype=jnp.float32, minval=-10.0, maxval=140.0
    )

    out = int_avg_pool2d(x, kernel_size=kernel_size, s_x=s_x, s_y=s_y)
    out = jax.block_until_ready(out)

    # Pure-JAX reference of the PyTorch forward pass.
    q = jnp.floor(jnp.clip(x, 0.0, 127.0))
    n, c, h, w = x.shape
    ref = (
        q.reshape(n, c, h // kernel_size, kernel_size, w // kernel_size, kernel_size)
        .mean(axis=(3, 5))
        * s_x
        / s_y
    )

    assert out.shape == (2, 4, 8, 8), out.shape
    assert jnp.allclose(out, ref, rtol=1e-5, atol=1e-5), float(
        jnp.max(jnp.abs(out - ref))
    )
    print("KERNEL_OK")
</pallas_src>

<mosaic_0001>
module attributes {stable_mosaic.version = 11 : i64} {
  func.func @_int_avgpool_kernel(%arg0: i32, %arg1: memref<8x256xf32, #tpu.memory_space<vmem>>, %arg2: memref<256x64xbf16, #tpu.memory_space<vmem>>, %arg3: memref<8x64xf32, #tpu.memory_space<vmem>>) attributes {dimension_semantics = [#tpu.dimension_semantics<parallel>], iteration_bounds = array<i64: 1>, scalar_prefetch = 0 : i64, scratch_operands = 0 : i64, tpu.core_type = #tpu.core_type<tc>, window_params = [{transform_indices = @transform_0, window_bounds = array<i64: 8, 256>}, {pipeline_mode = #tpu.pipeline_mode<synchronous>, transform_indices = @transform_1, window_bounds = array<i64: 256, 64>}, {transform_indices = @transform_2, window_bounds = array<i64: 8, 64>}]} {
    %c0 = arith.constant 0 : index
    %c0_0 = arith.constant 0 : index
    %0 = vector.load %arg1[%c0, %c0_0] : memref<8x256xf32, #tpu.memory_space<vmem>>, vector<8x256xf32>
    %cst = arith.constant 0.000000e+00 : f32
    %cst_1 = arith.constant 1.270000e+02 : f32
    %1 = vector.broadcast %cst : f32 to vector<8x256xf32>
    %2 = arith.maximumf %1, %0 : vector<8x256xf32>
    %3 = vector.broadcast %cst_1 : f32 to vector<8x256xf32>
    %4 = arith.minimumf %3, %2 : vector<8x256xf32>
    %5 = math.floor %4 : vector<8x256xf32>
    %6 = arith.truncf %5 : vector<8x256xf32> to vector<8x256xbf16>
    %c0_2 = arith.constant 0 : index
    %c0_3 = arith.constant 0 : index
    %7 = vector.load %arg2[%c0_2, %c0_3] : memref<256x64xbf16, #tpu.memory_space<vmem>>, vector<256x64xbf16>
    %cst_4 = arith.constant dense<0.000000e+00> : vector<8x64xf32>
    %8 = tpu.matmul %6, %7, %cst_4 {dimension_numbers = #tpu.dot_dimension_numbers<[1], [0], [0], [1], [0, 0, 1, 1], [], []>} : vector<8x256xbf16>, vector<256x64xbf16>, vector<8x64xf32> -> vector<8x64xf32>
    %cst_5 = arith.constant 1.250000e-01 : f32
    %9 = vector.broadcast %cst_5 : f32 to vector<8x64xf32>
    %10 = arith.mulf %8, %9 : vector<8x64xf32>
    %c0_6 = arith.constant 0 : index
    %c0_7 = arith.constant 0 : index
    %11 = vector.load %arg3[%c0_6, %c0_7] : memref<8x64xf32, #tpu.memory_space<vmem>>, vector<8x64xf32>
    tpu.vector_store %arg3[%c0_6, %c0_7], %10 {strides = array<i32>} : memref<8x64xf32, #tpu.memory_space<vmem>>, vector<8x64xf32>,
    return
  }
  func.func @transform_0(%arg0: i32) -> (i32, i32) {
    %c0_i32 = arith.constant 0 : i32
    %c0_i32_0 = arith.constant 0 : i32
    return %arg0, %c0_i32 : i32, i32
  }
  func.func @transform_1(%arg0: i32) -> (i32, i32) {
    %c0_i32 = arith.constant 0 : i32
    %c0_i32_0 = arith.constant 0 : i32
    %c0_i32_1 = arith.constant 0 : i32
    return %c0_i32, %c0_i32_0 : i32, i32
  }
  func.func @transform_2(%arg0: i32) -> (i32, i32) {
    %c0_i32 = arith.constant 0 : i32
    %c0_i32_0 = arith.constant 0 : i32
    return %arg0, %c0_i32 : i32, i32
  }
}

</mosaic_0001>

<bundles_post_ra>
// kernel: int_avg_pool2d.1
= control target key start
LH: loop header
LB: loop body
LE: loop exit
PB: predicated region body
PF: predicated region fallthrough
CT: control target
= control target key end

     0   :  { %vm191_vm0 = vcmask 523264   ;;  %s323_s1 = inlined_call_operand.vmem [shape: bf16[256,64], index: 1, kind: input, shape index: {}]   ;;  %s324_s0 = inlined_call_operand.vmem [shape: f32[8,256], index: 0, kind: input, shape index: {}]   ;;  %s325_s2 = inlined_call_operand.vmem [shape: f32[8,64], index: 2, kind: output, shape index: {}]  }
   0x1   :  { %v235_v0 = vld [vmem:[%s323_s1 + $0x40] sm:$0xff]   ;;  %v237_v2 = vld [vmem:[%s323_s1 + $0x48] sm:$0xff]   ;;  %v239_v4 = vld [vmem:[%s323_s1 + $0x50] sm:$0xff]  }
   0x2   :  { %v236_v1 = vld [vmem:[%s323_s1] sm:$0xff]   ;;  %213 = vmatprep.subr.bf16.mxu0 %v235_v0  ;;  %v238_v3 = vld [vmem:[%s323_s1 + $0x8] sm:$0xff]   ;;  %v240_v5 = vld [vmem:[%s323_s1 + $0x10] sm:$0xff]  }
   0x3   :  { %214 = vmatpush3.bf16.msra.mxu0 %v236_v1  ;;  %v241_v6 = vld [vmem:[%s323_s1 + $0x58] sm:$0xff]   ;;  %v243_v8 = vld [vmem:[%s323_s1 + $0x60] sm:$0xff]   ;;  %v245_v10 = vld [vmem:[%s323_s1 + $0x68] sm:$0xff]  }
   0x4   :  { %215 = vmatprep.subr.bf16.mxu0 %v237_v2  ;;  %v242_v7 = vld [vmem:[%s323_s1 + $0x18] sm:$0xff]   ;;  %v244_v9 = vld [vmem:[%s323_s1 + $0x20] sm:$0xff]   ;;  %v13_v12 = vld [vmem:[%s324_s0 + $0x8] sm:$0xff] }
   0x5   :  { %v12_v11 = vld [vmem:[%s324_s0] sm:$0xff]  ;;  %v15_v13 = vmax.f32 %v13_v12, 0.0  ;;  %v246_v15 = vld [vmem:[%s323_s1 + $0x28] sm:$0xff]   ;;  %v247_v17 = vld [vmem:[%s323_s1 + $0x70] sm:$0xff]  }
   0x6   :  { %v14_v14 = vmax.f32 %v12_v11, 0.0  ;;  %v248_v20 = vld [vmem:[%s323_s1 + $0x30] sm:$0xff]   ;;  %v249_v22 = vld [vmem:[%s323_s1 + $0x78] sm:$0xff]  }
   0x7   :  { %216 = vmatpush3.bf16.msra.mxu0 %v238_v3  ;;  %v17_v16 = vmin.f32 %v15_v13, 127.0  ;;  %v250_v24 = vld [vmem:[%s323_s1 + $0x38] sm:$0xff]  }
   0x8   :  { %217 = vmatprep.subr.bf16.mxu0 %v239_v4  ;;  %v16_v19 = vmin.f32 %v14_v14, 127.0 }
   0x9   :  { %v19_v18 = vfloor.f32 %v17_v16 }
   0xa   :  { %v18_v23 = vfloor.f32 %v16_v19 }
   0xb   :  { %218 = vmatpush3.bf16.msra.mxu0 %v240_v5  ;;  %v21_v21 = vpack.c.bf16 %v19_v18, %v19_v18 }
   0xc   :  { %219 = vmatprep.subr.bf16.mxu0 %v241_v6  ;;  %v20_v25 = vpack.c.bf16 %v18_v23, %v18_v23 }
   0xd   :  { %182 = vmatprep.mubr.bf16.mxu0 %v21_v21 }
   0xf   :  { %220 = vmatpush3.bf16.msra.mxu0 %v242_v7 }
  0x10   :  { %221 = vmatprep.subr.bf16.mxu0 %v243_v8 }
  0x13   :  { %222 = vmatpush3.bf16.msra.mxu0 %v244_v9 }
  0x14   :  { %223 = vmatprep.subr.bf16.mxu0 %v245_v10 }
  0x17   :  { %224 = vmatpush3.bf16.msra.mxu0 %v246_v15 }
  0x18   :  { %225 = vmatprep.subr.bf16.mxu0 %v247_v17 }
  0x1b   :  { %226 = vmatpush3.bf16.msra.mxu0 %v248_v20 }
  0x1c   :  { %227 = vmatprep.subr.bf16.mxu0 %v249_v22 }
  0x1f   :  { %228 = vmatpush3.bf16.msra.mxu0 %v250_v24 }
  0x22   :  { %183 = vmatmul.mubr.bf16.vlgmr.msra.gmra.mrb[0].mxu0 %v20_v25 }
  0xf5   :  { %v229_v26 = vpop.f32.mrb[0].mxu0 }
  0xf6   :  { %v230_v27 = vpop.f32.mrb[1].mxu0 }
  0xf7   :  { %v231_v28 = vadd.f32 %v230_v27, %v229_v26  ;;  %v232_v29 = vpop.f32.mrb[2].mxu0 }
  0xf8   :  { %v233_v30 = vpop.f32.mrb[3].mxu0 }
  0xf9   :  { %v190_v31 = vmul.f32 0.125, %v231_v28 }
  0xfb   :  { %192 = vst.msk [vmem:[%s325_s2] sm:$0xff] %vm191_vm0, %v190_v31 }

</bundles_post_ra>
